<compile_context>
chip_gen: v7x
topology: tpu7x:2x2x1
jax: 0.10.0
libtpu: 0.0.40
codegen_flags: <defaults>
</compile_context>

<pallas_src>
import math
import jax
import jax.numpy as jnp
from jax.experimental import pallas as pl
from jax.experimental.pallas import tpu as pltpu


def _round_up(x, m):
    return (x + m - 1) // m * m


def _gelu_tanh(x):
    # GELU with tanh approximation (matches nn.GELU(approximate='tanh')); f32 math.
    c = math.sqrt(2.0 / math.pi)
    return 0.5 * x * (1.0 + jnp.tanh(c * (x + 0.044715 * x * x * x)))


def _make_kernel(tb):
    def kernel(drop_ref,   # SMEM (B_pad,) int32  (scalar prefetch; 1 => drop this batch)
               cap_ref,    # VMEM (TB, T_pad, C_pad) bf16
               yemb_ref,   # VMEM (T_pad, C_pad)     bf16
               w1_ref,     # VMEM (C_pad, H_pad)     bf16
               b1_ref,     # VMEM (1, H_pad)         f32
               w2_ref,     # VMEM (H_pad, H_pad)     bf16
               b2_ref,     # VMEM (1, H_pad)         f32
               out_ref):   # VMEM (TB*T_pad, H_pad)  caller dtype
        base = pl.program_id(0) * tb
        y = yemb_ref[...]                                   # (T_pad, C_pad) bf16

        # token_drop (classifier-free guidance): per-batch scalar-gated select in bf16.
        parts = []
        for b in range(tb):                                 # static unroll; tb is small
            d = drop_ref[base + b]                          # scalar int32 from SMEM
            parts.append(jnp.where(d != 0, y, cap_ref[b]))  # (T_pad, C_pad) bf16
        x2 = parts[0] if tb == 1 else jnp.concatenate(parts, axis=0)  # (tb*T_pad, C_pad)

        # Mlp: fc1 -> GELU(tanh) -> fc2. bf16 MXU operands, f32 accumulation & activation.
        h = jnp.dot(x2, w1_ref[...], preferred_element_type=jnp.float32) + b1_ref[...]
        h = _gelu_tanh(h)
        o = jnp.dot(h.astype(jnp.bfloat16), w2_ref[...],
                    preferred_element_type=jnp.float32) + b2_ref[...]
        out_ref[...] = o.astype(out_ref.dtype)

    return kernel


def caption_embedder_forward(caption, y_embedding, w1, b1, w2, b2, uncond_prob,
                             train=True, force_drop_ids=None, rng_key=None):
    """caption: (B, 1, T, C); y_embedding: (T, C); w1: (C, H); w2: (H, H)."""
    B, one, T, C = caption.shape
    assert one == 1
    if train:
        assert caption.shape[2:] == y_embedding.shape
    H = w1.shape[1]
    out_dtype = caption.dtype

    # --- classifier-free-guidance drop ids (matches PyTorch token_drop logic) ----------
    use_dropout = uncond_prob > 0
    if (train and use_dropout) or (force_drop_ids is not None):
        if force_drop_ids is not None:
            drop_ids = (force_drop_ids == 1)
        else:
            if rng_key is None:
                # TODO(synk): PyTorch draws fresh randomness each forward; callers should
                # thread a fresh rng_key (default key makes the dropout deterministic).
                rng_key = jax.random.PRNGKey(0)
            drop_ids = jax.random.uniform(rng_key, (B,)) < uncond_prob
    else:
        drop_ids = jnp.zeros((B,), bool)
    drop_ids = drop_ids.astype(jnp.int32)

    # --- lane/sublane-aligned sizes and batch-aligned row tiling ----------------------
    T_pad = _round_up(T, 8)
    C_pad = _round_up(C, 128)
    H_pad = _round_up(H, 128)
    TB = max(1, min(512 // T_pad, 32))          # target ~512 fused rows per grid step
    if B >= 2:
        TB = min(TB, max(1, B // 2))            # keep >=2 grid steps (v7x megacore)
    TB = max(1, TB)
    B_pad = _round_up(B, TB)
    M_TILE = TB * T_pad

    def pad_cast(x, shape_pad, dtype):
        # Skip work when already aligned / already the right dtype (no HBM pre-pass).
        if x.dtype != dtype:
            x = x.astype(dtype)
        pads = tuple((0, p - s) for s, p in zip(x.shape, shape_pad))
        if any(p[1] for p in pads):
            x = jnp.pad(x, pads)
        return x

    cap_in = pad_cast(caption.reshape(B, T, C), (B_pad, T_pad, C_pad), jnp.bfloat16)
    yemb_in = pad_cast(y_embedding, (T_pad, C_pad), jnp.bfloat16)
    w1_in = pad_cast(w1, (C_pad, H_pad), jnp.bfloat16)
    w2_in = pad_cast(w2, (H_pad, H_pad), jnp.bfloat16)
    b1_in = pad_cast(b1.reshape(1, H), (1, H_pad), jnp.float32)
    b2_in = pad_cast(b2.reshape(1, H), (1, H_pad), jnp.float32)
    drop_in = pad_cast(drop_ids, (B_pad,), jnp.int32)

    grid = (B_pad // TB,)
    kernel = _make_kernel(TB)

    # VMEM budget: resident weights (+ possible double-buffer fallback), y_emb, biases,
    # double-buffered caption/output tiles. Capped at 64 MiB (v7x per-TC physical VMEM).
    out_isz = jnp.dtype(out_dtype).itemsize
    est = 2 * (C_pad * H_pad + H_pad * H_pad) * 2          # weights (x2: fallback safety)
    est += 2 * T_pad * C_pad * 2 + 4 * H_pad * 4           # y_embedding + biases
    est += 2 * M_TILE * C_pad * 2                          # caption tile, double-buffered
    est += 2 * M_TILE * H_pad * out_isz                    # output tile, double-buffered
    vmem_limit = int(min(64 << 20, max(2 * est + (2 << 20), 16 << 20)))

    def build(single_buffer_consts):
        def const_spec(shape):
            idx = lambda i, d, _n=len(shape): (0,) * _n
            if single_buffer_consts:
                return pl.BlockSpec(shape, idx, pipeline_mode=pl.Buffered(1))
            return pl.BlockSpec(shape, idx)

        return pl.pallas_call(
            kernel,
            out_shape=jax.ShapeDtypeStruct((B_pad * T_pad, H_pad), out_dtype),
            grid_spec=pltpu.PrefetchScalarGridSpec(
                num_scalar_prefetch=1,                      # drop_ids -> SMEM
                grid=grid,
                in_specs=[
                    pl.BlockSpec((TB, T_pad, C_pad), lambda i, d: (i, 0, 0)),  # caption
                    const_spec((T_pad, C_pad)),                                # y_embedding
                    const_spec((C_pad, H_pad)),                                # w1 (bf16)
                    const_spec((1, H_pad)),                                    # b1 (f32)
                    const_spec((H_pad, H_pad)),                                # w2 (bf16)
                    const_spec((1, H_pad)),                                    # b2 (f32)
                ],
                out_specs=pl.BlockSpec((M_TILE, H_pad), lambda i, d: (i, 0)),
            ),
            compiler_params=pltpu.CompilerParams(
                dimension_semantics=("parallel",),          # disjoint output row tiles
                vmem_limit_bytes=vmem_limit),
        )

    args = (drop_in, cap_in, yemb_in, w1_in, b1_in, w2_in, b2_in)
    try:
        out = build(True)(*args)
    except Exception:
        # pipeline_mode / Buffered(1) unsupported on this JAX version: default buffering.
        out = build(False)(*args)

    out = out.reshape(B_pad, T_pad, H_pad)[:B, :T, :H]
    return out.reshape(B, 1, T, H)


def _reference(caption, y_embedding, w1, b1, w2, b2, force_drop_ids,
               matmul_dtype=jnp.float32):
    # pure-JAX reference of the same forward pass (token_drop + Mlp)
    drop = (force_drop_ids == 1)[:, None, None, None]
    x = jnp.where(drop, y_embedding.astype(matmul_dtype), caption.astype(matmul_dtype))
    h = jnp.dot(x, w1.astype(matmul_dtype), preferred_element_type=jnp.float32) + b1
    h = _gelu_tanh(h)
    o = jnp.dot(h.astype(matmul_dtype), w2.astype(matmul_dtype),
                preferred_element_type=jnp.float32) + b2
    return o.astype(jnp.float32)


if __name__ == "__main__":
    key = jax.random.PRNGKey(0)
    B, T, C, H = 4, 8, 32, 32           # batch, token_num, in_channels, hidden_size
    uncond_prob = 0.1

    k_cap, k_emb, k_w1, k_b1, k_w2, k_b2 = jax.random.split(key, 6)

    caption = jax.random.normal(k_cap, (B, 1, T, C), jnp.float32)
    # register_buffer('y_embedding', randn(token_num, in_channels) / in_channels ** 0.5)
    y_embedding = jax.random.normal(k_emb, (T, C), jnp.float32) / math.sqrt(C)

    # Mlp params (deterministic synthetic init, Linear-like scaling)
    w1 = jax.random.normal(k_w1, (C, H), jnp.float32) / math.sqrt(C)
    b1 = jax.random.normal(k_b1, (H,), jnp.float32) * 0.01
    w2 = jax.random.normal(k_w2, (H, H), jnp.float32) / math.sqrt(H)
    b2 = jax.random.normal(k_b2, (H,), jnp.float32) * 0.01

    # deterministic classifier-free-guidance drop: drop batches 0 and 3
    force_drop_ids = jnp.array([1, 0, 0, 1], jnp.int32)

    out = caption_embedder_forward(caption, y_embedding, w1, b1, w2, b2,
                                   uncond_prob, train=True,
                                   force_drop_ids=force_drop_ids)
    out = jax.block_until_ready(out)
    assert out.shape == (B, 1, T, H)
    assert bool(jnp.all(jnp.isfinite(out.astype(jnp.float32))))

    # strict check against a reference using the same bf16 matmul/select operands
    ref_bf16 = _reference(caption, y_embedding, w1, b1, w2, b2, force_drop_ids,
                          matmul_dtype=jnp.bfloat16)
    assert jnp.allclose(out.astype(jnp.float32), ref_bf16, atol=2e-3, rtol=2e-3)

    # loose check against the full-f32 PyTorch-equivalent reference
    ref_f32 = _reference(caption, y_embedding, w1, b1, w2, b2, force_drop_ids,
                         matmul_dtype=jnp.float32)
    assert jnp.allclose(out.astype(jnp.float32), ref_f32, atol=5e-2, rtol=5e-2)

    # exercise the random CFG-dropout path (train=True, no forced ids)
    out_rand = caption_embedder_forward(caption, y_embedding, w1, b1, w2, b2,
                                        uncond_prob, train=True,
                                        force_drop_ids=None,
                                        rng_key=jax.random.PRNGKey(123))
    out_rand = jax.block_until_ready(out_rand)
    assert out_rand.shape == (B, 1, T, H)

    print("KERNEL_OK")
</pallas_src>

<mosaic_0001>
module attributes {stable_mosaic.version = 11 : i64} {
  func.func @kernel(%arg0: i32, %arg1: memref<4xi32, #tpu.memory_space<smem>>, %arg2: memref<2x8x128xbf16, #tpu.memory_space<vmem>>, %arg3: memref<8x128xbf16, #tpu.memory_space<vmem>>, %arg4: memref<128x128xbf16, #tpu.memory_space<vmem>>, %arg5: memref<1x128xf32, #tpu.memory_space<vmem>>, %arg6: memref<128x128xbf16, #tpu.memory_space<vmem>>, %arg7: memref<1x128xf32, #tpu.memory_space<vmem>>, %arg8: memref<16x128xf32, #tpu.memory_space<vmem>>) attributes {dimension_semantics = [#tpu.dimension_semantics<parallel>], iteration_bounds = array<i64: 2>, scalar_prefetch = 1 : i64, scratch_operands = 0 : i64, tpu.core_type = #tpu.core_type<tc>, window_params = [{transform_indices = @transform_0, window_bounds = array<i64: 2, 8, 128>}, {pipeline_mode = #tpu.pipeline_mode<synchronous>, transform_indices = @transform_1, window_bounds = array<i64: 8, 128>}, {pipeline_mode = #tpu.pipeline_mode<synchronous>, transform_indices = @transform_2, window_bounds = array<i64: 128, 128>}, {pipeline_mode = #tpu.pipeline_mode<synchronous>, transform_indices = @transform_3, window_bounds = array<i64: 1, 128>}, {pipeline_mode = #tpu.pipeline_mode<synchronous>, transform_indices = @transform_4, window_bounds = array<i64: 128, 128>}, {pipeline_mode = #tpu.pipeline_mode<synchronous>, transform_indices = @transform_5, window_bounds = array<i64: 1, 128>}, {transform_indices = @transform_6, window_bounds = array<i64: 16, 128>}]} {
    %c2_i32 = arith.constant 2 : i32
    %0 = arith.muli %arg0, %c2_i32 : i32
    %c0 = arith.constant 0 : index
    %c0_0 = arith.constant 0 : index
    %1 = vector.load %arg3[%c0, %c0_0] : memref<8x128xbf16, #tpu.memory_space<vmem>>, vector<8x128xbf16>
    %c0_i32 = arith.constant 0 : i32
    %2 = arith.addi %0, %c0_i32 : i32
    %3 = arith.index_cast %2 : i32 to index
    %4 = memref.load %arg1[%3] : memref<4xi32, #tpu.memory_space<smem>>
    %c0_i32_1 = arith.constant 0 : i32
    %5 = arith.cmpi ne, %4, %c0_i32_1 : i32
    %c0_2 = arith.constant 0 : index
    %c0_3 = arith.constant 0 : index
    %c0_4 = arith.constant 0 : index
    %6 = vector.load %arg2[%c0_2, %c0_3, %c0_4] : memref<2x8x128xbf16, #tpu.memory_space<vmem>>, vector<1x8x128xbf16>
    %7 = vector.shape_cast %6 : vector<1x8x128xbf16> to vector<8x128xbf16>
    %8 = arith.select %5, %1, %7 : vector<8x128xbf16>
    %c1_i32 = arith.constant 1 : i32
    %9 = arith.addi %0, %c1_i32 : i32
    %10 = arith.index_cast %9 : i32 to index
    %11 = memref.load %arg1[%10] : memref<4xi32, #tpu.memory_space<smem>>
    %c0_i32_5 = arith.constant 0 : i32
    %12 = arith.cmpi ne, %11, %c0_i32_5 : i32
    %c1 = arith.constant 1 : index
    %c0_6 = arith.constant 0 : index
    %c0_7 = arith.constant 0 : index
    %13 = vector.load %arg2[%c1, %c0_6, %c0_7] : memref<2x8x128xbf16, #tpu.memory_space<vmem>>, vector<1x8x128xbf16>
    %14 = vector.shape_cast %13 : vector<1x8x128xbf16> to vector<8x128xbf16>
    %15 = arith.select %12, %1, %14 : vector<8x128xbf16>
    %16 = tpu.concatenate %8, %15 in 0 : vector<8x128xbf16>, vector<8x128xbf16> -> vector<16x128xbf16>
    %c0_8 = arith.constant 0 : index
    %c0_9 = arith.constant 0 : index
    %17 = vector.load %arg4[%c0_8, %c0_9] : memref<128x128xbf16, #tpu.memory_space<vmem>>, vector<128x128xbf16>
    %cst = arith.constant dense<0.000000e+00> : vector<16x128xf32>
    %18 = tpu.matmul %16, %17, %cst {dimension_numbers = #tpu.dot_dimension_numbers<[1], [0], [0], [1], [0, 0, 1, 1], [], []>} : vector<16x128xbf16>, vector<128x128xbf16>, vector<16x128xf32> -> vector<16x128xf32>
    %c0_10 = arith.constant 0 : index
    %c0_11 = arith.constant 0 : index
    %19 = vector.load %arg5[%c0_10, %c0_11] : memref<1x128xf32, #tpu.memory_space<vmem>>, vector<1x128xf32>
    %20 = vector.broadcast %19 : vector<1x128xf32> to vector<16x128xf32>
    %21 = arith.addf %18, %20 : vector<16x128xf32>
    %cst_12 = arith.constant 5.000000e-01 : f32
    %22 = vector.broadcast %cst_12 : f32 to vector<16x128xf32>
    %23 = arith.mulf %22, %21 : vector<16x128xf32>
    %cst_13 = arith.constant 4.471500e-02 : f32
    %24 = vector.broadcast %cst_13 : f32 to vector<16x128xf32>
    %25 = arith.mulf %24, %21 : vector<16x128xf32>
    %26 = arith.mulf %25, %21 : vector<16x128xf32>
    %27 = arith.mulf %26, %21 : vector<16x128xf32>
    %28 = arith.addf %21, %27 : vector<16x128xf32>
    %cst_14 = arith.constant 0.797884583 : f32
    %29 = vector.broadcast %cst_14 : f32 to vector<16x128xf32>
    %30 = arith.mulf %29, %28 : vector<16x128xf32>
    %31 = math.tanh %30 : vector<16x128xf32>
    %cst_15 = arith.constant 1.000000e+00 : f32
    %32 = vector.broadcast %cst_15 : f32 to vector<16x128xf32>
    %33 = arith.addf %32, %31 : vector<16x128xf32>
    %34 = arith.mulf %23, %33 : vector<16x128xf32>
    %35 = arith.truncf %34 : vector<16x128xf32> to vector<16x128xbf16>
    %c0_16 = arith.constant 0 : index
    %c0_17 = arith.constant 0 : index
    %36 = vector.load %arg6[%c0_16, %c0_17] : memref<128x128xbf16, #tpu.memory_space<vmem>>, vector<128x128xbf16>
    %cst_18 = arith.constant dense<0.000000e+00> : vector<16x128xf32>
    %37 = tpu.matmul %35, %36, %cst_18 {dimension_numbers = #tpu.dot_dimension_numbers<[1], [0], [0], [1], [0, 0, 1, 1], [], []>} : vector<16x128xbf16>, vector<128x128xbf16>, vector<16x128xf32> -> vector<16x128xf32>
    %c0_19 = arith.constant 0 : index
    %c0_20 = arith.constant 0 : index
    %38 = vector.load %arg7[%c0_19, %c0_20] : memref<1x128xf32, #tpu.memory_space<vmem>>, vector<1x128xf32>
    %39 = vector.broadcast %38 : vector<1x128xf32> to vector<16x128xf32>
    %40 = arith.addf %37, %39 : vector<16x128xf32>
    %c0_21 = arith.constant 0 : index
    %c0_22 = arith.constant 0 : index
    %41 = vector.load %arg8[%c0_21, %c0_22] : memref<16x128xf32, #tpu.memory_space<vmem>>, vector<16x128xf32>
    tpu.vector_store %arg8[%c0_21, %c0_22], %40 {strides = array<i32>} : memref<16x128xf32, #tpu.memory_space<vmem>>, vector<16x128xf32>,
    return
  }
  func.func @transform_0(%arg0: i32, %arg1: memref<4xi32, #tpu.memory_space<smem>>) -> (i32, i32, i32) {
    %c0_i32 = arith.constant 0 : i32
    %c0_i32_0 = arith.constant 0 : i32
    %c0_i32_1 = arith.constant 0 : i32
    return %arg0, %c0_i32, %c0_i32_0 : i32, i32, i32
  }
  func.func @transform_1(%arg0: i32, %arg1: memref<4xi32, #tpu.memory_space<smem>>) -> (i32, i32) {
    %c0_i32 = arith.constant 0 : i32
    %c0_i32_0 = arith.constant 0 : i32
    %c0_i32_1 = arith.constant 0 : i32
    return %c0_i32, %c0_i32_0 : i32, i32
  }
  func.func @transform_2(%arg0: i32, %arg1: memref<4xi32, #tpu.memory_space<smem>>) -> (i32, i32) {
    %c0_i32 = arith.constant 0 : i32
    %c0_i32_0 = arith.constant 0 : i32
    %c0_i32_1 = arith.constant 0 : i32
    return %c0_i32, %c0_i32_0 : i32, i32
  }
  func.func @transform_3(%arg0: i32, %arg1: memref<4xi32, #tpu.memory_space<smem>>) -> (i32, i32) {
    %c0_i32 = arith.constant 0 : i32
    %c0_i32_0 = arith.constant 0 : i32
    %c0_i32_1 = arith.constant 0 : i32
    return %c0_i32, %c0_i32_0 : i32, i32
  }
  func.func @transform_4(%arg0: i32, %arg1: memref<4xi32, #tpu.memory_space<smem>>) -> (i32, i32) {
    %c0_i32 = arith.constant 0 : i32
    %c0_i32_0 = arith.constant 0 : i32
    %c0_i32_1 = arith.constant 0 : i32
    return %c0_i32, %c0_i32_0 : i32, i32
  }
  func.func @transform_5(%arg0: i32, %arg1: memref<4xi32, #tpu.memory_space<smem>>) -> (i32, i32) {
    %c0_i32 = arith.constant 0 : i32
    %c0_i32_0 = arith.constant 0 : i32
    %c0_i32_1 = arith.constant 0 : i32
    return %c0_i32, %c0_i32_0 : i32, i32
  }
  func.func @transform_6(%arg0: i32, %arg1: memref<4xi32, #tpu.memory_space<smem>>) -> (i32, i32) {
    %c0_i32 = arith.constant 0 : i32
    %c0_i32_0 = arith.constant 0 : i32
    return %arg0, %c0_i32 : i32, i32
  }
}

module attributes {stable_mosaic.version = 11 : i64} {
  func.func @kernel(%arg0: i32, %arg1: memref<4xi32, #tpu.memory_space<smem>>, %arg2: memref<2x8x128xbf16, #tpu.memory_space<vmem>>, %arg3: memref<8x128xbf16, #tpu.memory_space<vmem>>, %arg4: memref<128x128xbf16, #tpu.memory_space<vmem>>, %arg5: memref<1x128xf32, #tpu.memory_space<vmem>>, %arg6: memref<128x128xbf16, #tpu.memory_space<vmem>>, %arg7: memref<1x128xf32, #tpu.memory_space<vmem>>, %arg8: memref<16x128xf32, #tpu.memory_space<vmem>>) attributes {dimension_semantics = [#tpu.dimension_semantics<parallel>], iteration_bounds = array<i64: 2>, scalar_prefetch = 1 : i64, scratch_operands = 0 : i64, tpu.core_type = #tpu.core_type<tc>, window_params = [{transform_indices = @transform_0, window_bounds = array<i64: 2, 8, 128>}, {pipeline_mode = #tpu.pipeline_mode<synchronous>, transform_indices = @transform_1, window_bounds = array<i64: 8, 128>}, {pipeline_mode = #tpu.pipeline_mode<synchronous>, transform_indices = @transform_2, window_bounds = array<i64: 128, 128>}, {pipeline_mode = #tpu.pipeline_mode<synchronous>, transform_indices = @transform_3, window_bounds = array<i64: 1, 128>}, {pipeline_mode = #tpu.pipeline_mode<synchronous>, transform_indices = @transform_4, window_bounds = array<i64: 128, 128>}, {pipeline_mode = #tpu.pipeline_mode<synchronous>, transform_indices = @transform_5, window_bounds = array<i64: 1, 128>}, {transform_indices = @transform_6, window_bounds = array<i64: 16, 128>}]} {
    %c2_i32 = arith.constant 2 : i32
    %0 = arith.muli %arg0, %c2_i32 : i32
    %c0 = arith.constant 0 : index
    %c0_0 = arith.constant 0 : index
    %1 = vector.load %arg3[%c0, %c0_0] : memref<8x128xbf16, #tpu.memory_space<vmem>>, vector<8x128xbf16>
    %c0_i32 = arith.constant 0 : i32
    %2 = arith.addi %0, %c0_i32 : i32
    %3 = arith.index_cast %2 : i32 to index
    %4 = memref.load %arg1[%3] : memref<4xi32, #tpu.memory_space<smem>>
    %c0_i32_1 = arith.constant 0 : i32
    %5 = arith.cmpi ne, %4, %c0_i32_1 : i32
    %c0_2 = arith.constant 0 : index
    %c0_3 = arith.constant 0 : index
    %c0_4 = arith.constant 0 : index
    %6 = vector.load %arg2[%c0_2, %c0_3, %c0_4] : memref<2x8x128xbf16, #tpu.memory_space<vmem>>, vector<1x8x128xbf16>
    %7 = vector.shape_cast %6 : vector<1x8x128xbf16> to vector<8x128xbf16>
    %8 = arith.select %5, %1, %7 : vector<8x128xbf16>
    %c1_i32 = arith.constant 1 : i32
    %9 = arith.addi %0, %c1_i32 : i32
    %10 = arith.index_cast %9 : i32 to index
    %11 = memref.load %arg1[%10] : memref<4xi32, #tpu.memory_space<smem>>
    %c0_i32_5 = arith.constant 0 : i32
    %12 = arith.cmpi ne, %11, %c0_i32_5 : i32
    %c1 = arith.constant 1 : index
    %c0_6 = arith.constant 0 : index
    %c0_7 = arith.constant 0 : index
    %13 = vector.load %arg2[%c1, %c0_6, %c0_7] : memref<2x8x128xbf16, #tpu.memory_space<vmem>>, vector<1x8x128xbf16>
    %14 = vector.shape_cast %13 : vector<1x8x128xbf16> to vector<8x128xbf16>
    %15 = arith.select %12, %1, %14 : vector<8x128xbf16>
    %16 = tpu.concatenate %8, %15 in 0 : vector<8x128xbf16>, vector<8x128xbf16> -> vector<16x128xbf16>
    %c0_8 = arith.constant 0 : index
    %c0_9 = arith.constant 0 : index
    %17 = vector.load %arg4[%c0_8, %c0_9] : memref<128x128xbf16, #tpu.memory_space<vmem>>, vector<128x128xbf16>
    %cst = arith.constant dense<0.000000e+00> : vector<16x128xf32>
    %18 = tpu.matmul %16, %17, %cst {dimension_numbers = #tpu.dot_dimension_numbers<[1], [0], [0], [1], [0, 0, 1, 1], [], []>} : vector<16x128xbf16>, vector<128x128xbf16>, vector<16x128xf32> -> vector<16x128xf32>
    %c0_10 = arith.constant 0 : index
    %c0_11 = arith.constant 0 : index
    %19 = vector.load %arg5[%c0_10, %c0_11] : memref<1x128xf32, #tpu.memory_space<vmem>>, vector<1x128xf32>
    %20 = vector.broadcast %19 : vector<1x128xf32> to vector<16x128xf32>
    %21 = arith.addf %18, %20 : vector<16x128xf32>
    %cst_12 = arith.constant 5.000000e-01 : f32
    %22 = vector.broadcast %cst_12 : f32 to vector<16x128xf32>
    %23 = arith.mulf %22, %21 : vector<16x128xf32>
    %cst_13 = arith.constant 4.471500e-02 : f32
    %24 = vector.broadcast %cst_13 : f32 to vector<16x128xf32>
    %25 = arith.mulf %24, %21 : vector<16x128xf32>
    %26 = arith.mulf %25, %21 : vector<16x128xf32>
    %27 = arith.mulf %26, %21 : vector<16x128xf32>
    %28 = arith.addf %21, %27 : vector<16x128xf32>
    %cst_14 = arith.constant 0.797884583 : f32
    %29 = vector.broadcast %cst_14 : f32 to vector<16x128xf32>
    %30 = arith.mulf %29, %28 : vector<16x128xf32>
    %31 = math.tanh %30 : vector<16x128xf32>
    %cst_15 = arith.constant 1.000000e+00 : f32
    %32 = vector.broadcast %cst_15 : f32 to vector<16x128xf32>
    %33 = arith.addf %32, %31 : vector<16x128xf32>
    %34 = arith.mulf %23, %33 : vector<16x128xf32>
    %35 = arith.truncf %34 : vector<16x128xf32> to vector<16x128xbf16>
    %c0_16 = arith.constant 0 : index
    %c0_17 = arith.constant 0 : index
    %36 = vector.load %arg6[%c0_16, %c0_17] : memref<128x128xbf16, #tpu.memory_space<vmem>>, vector<128x128xbf16>
    %cst_18 = arith.constant dense<0.000000e+00> : vector<16x128xf32>
    %37 = tpu.matmul %35, %36, %cst_18 {dimension_numbers = #tpu.dot_dimension_numbers<[1], [0], [0], [1], [0, 0, 1, 1], [], []>} : vector<16x128xbf16>, vector<128x128xbf16>, vector<16x128xf32> -> vector<16x128xf32>
    %c0_19 = arith.constant 0 : index
    %c0_20 = arith.constant 0 : index
    %38 = vector.load %arg7[%c0_19, %c0_20] : memref<1x128xf32, #tpu.memory_space<vmem>>, vector<1x128xf32>
    %39 = vector.broadcast %38 : vector<1x128xf32> to vector<16x128xf32>
    %40 = arith.addf %37, %39 : vector<16x128xf32>
    %c0_21 = arith.constant 0 : index
    %c0_22 = arith.constant 0 : index
    %41 = vector.load %arg8[%c0_21, %c0_22] : memref<16x128xf32, #tpu.memory_space<vmem>>, vector<16x128xf32>
    tpu.vector_store %arg8[%c0_21, %c0_22], %40 {strides = array<i32>} : memref<16x128xf32, #tpu.memory_space<vmem>>, vector<16x128xf32>,
    return
  }
  func.func @transform_0(%arg0: i32, %arg1: memref<4xi32, #tpu.memory_space<smem>>) -> (i32, i32, i32) {
    %c0_i32 = arith.constant 0 : i32
    %c0_i32_0 = arith.constant 0 : i32
    %c0_i32_1 = arith.constant 0 : i32
    return %arg0, %c0_i32, %c0_i32_0 : i32, i32, i32
  }
  func.func @transform_1(%arg0: i32, %arg1: memref<4xi32, #tpu.memory_space<smem>>) -> (i32, i32) {
    %c0_i32 = arith.constant 0 : i32
    %c0_i32_0 = arith.constant 0 : i32
    %c0_i32_1 = arith.constant 0 : i32
    return %c0_i32, %c0_i32_0 : i32, i32
  }
  func.func @transform_2(%arg0: i32, %arg1: memref<4xi32, #tpu.memory_space<smem>>) -> (i32, i32) {
    %c0_i32 = arith.constant 0 : i32
    %c0_i32_0 = arith.constant 0 : i32
    %c0_i32_1 = arith.constant 0 : i32
    return %c0_i32, %c0_i32_0 : i32, i32
  }
  func.func @transform_3(%arg0: i32, %arg1: memref<4xi32, #tpu.memory_space<smem>>) -> (i32, i32) {
    %c0_i32 = arith.constant 0 : i32
    %c0_i32_0 = arith.constant 0 : i32
    %c0_i32_1 = arith.constant 0 : i32
    return %c0_i32, %c0_i32_0 : i32, i32
  }
  func.func @transform_4(%arg0: i32, %arg1: memref<4xi32, #tpu.memory_space<smem>>) -> (i32, i32) {
    %c0_i32 = arith.constant 0 : i32
    %c0_i32_0 = arith.constant 0 : i32
    %c0_i32_1 = arith.constant 0 : i32
    return %c0_i32, %c0_i32_0 : i32, i32
  }
  func.func @transform_5(%arg0: i32, %arg1: memref<4xi32, #tpu.memory_space<smem>>) -> (i32, i32) {
    %c0_i32 = arith.constant 0 : i32
    %c0_i32_0 = arith.constant 0 : i32
    %c0_i32_1 = arith.constant 0 : i32
    return %c0_i32, %c0_i32_0 : i32, i32
  }
  func.func @transform_6(%arg0: i32, %arg1: memref<4xi32, #tpu.memory_space<smem>>) -> (i32, i32) {
    %c0_i32 = arith.constant 0 : i32
    %c0_i32_0 = arith.constant 0 : i32
    return %arg0, %c0_i32 : i32, i32
  }
}

</mosaic_0001>

<bundles_post_ra>
// kernel: tpu_custom_call.1
= control target key start
LH: loop header
LB: loop body
LE: loop exit
PB: predicated region body
PF: predicated region fallthrough
CT: control target
= control target key end

     0   :  { %s1386_s0 = inlined_call_operand.hbm [shape: s32[4], index: 0, kind: input, shape index: {}]   ;;  %s1387_s1 = inlined_call_operand.hbm [shape: bf16[4,8,128], index: 1, kind: input, shape index: {}]   ;;  %s1388_s2 = inlined_call_operand.vmem [shape: bf16[8,128], index: 2, kind: input, shape index: {}]   ;;  %s1389_s3 = inlined_call_operand.hbm [shape: bf16[128,128], index: 3, kind: input, shape index: {}]   ;;  %s1390_s4 = inlined_call_operand.vmem [shape: f32[1,128], index: 4, kind: input, shape index: {}]   ;;  %s1391_s5 = inlined_call_operand.hbm [shape: bf16[128,128], index: 5, kind: input, shape index: {}]   ;;  %s1392_s6 = inlined_call_operand.vmem [shape: f32[1,128], index: 6, kind: input, shape index: {}]   ;;  %s1393_s7 = inlined_call_operand.hbm [shape: f32[32,128], index: 7, kind: output, shape index: {}]  }
   0x1   :  { %s877_s26 = scalar_lea.hbm %s1386_s0, 16 }
   0x2   :  { %p878_p0 = scmp.ne.s32.totalorder %s1386_s0, %s877_s26  ;;  %p881_p1 = scmp.lt.u32.totalorder %s877_s26, %s1386_s0 }
   0x4   :  { %p883_p2 = pnand %p881_p1, %p878_p0 }
   0x6   :  { %886 = shalt.err (!%p883_p2)  }
   0x7   :  { %s1047_s8 = smov [#allocation3]  }
   0x8   :  { %13 = dma.hbm_to_smem %s1386_s0, 16, %s1047_s8, [#allocation2] }
   0x9   :  { %1017 = dma.done.wait [#allocation2], 16 }
   0xa   :  { %1018 = vsyncadd [#allocation2], 4294967280 }
   0xb   :  { %15 = sfence }
   0xc   :  { %16 = vsyncpa [#allocation5], 0 }
   0xd   :  { %18 = vsyncpa [#allocation5 + $0x1], 0 }
   0xe   :  { %19 = vsyncpa [#allocation8], 0 }
   0xf   :  { %20 = vsyncpa [#allocation6], 0 }
  0x10   :  { %22 = vsyncpa [#allocation6 + $0x1], 0  ;;  %s1110_s11 = smov 0   ;;  %s1112_s12 = smov 0  }
  0x11   :  { %s1114_s13 = smov 0   ;;  %s1116_s14 = smov 0  }
  0x12 LB: > { %s1131_s0 = sadd.s32 4294967295, %s1045_s14   ;;  %s684_s15 = sadd.s32 4294967294, %s1045_s14   ;;  %s1045_s14 = sphi %s1116_s14, %s1413_s14   ;;  %s1041_s13 = sphi %s1114_s13, %s1412_s13   ;;  %s1037_s12 = sphi %s1112_s12, %s1411_s12   ;;  %s1033_s11 = sphi %s1110_s11, %s1410_s11  }
  0x13   : > { %p48_p3 = scmp.ne.s32.totalorder %s1037_s12, %s1033_s11  ;;  %p1394_p4 = scmp.eq.s32.totalorder %s1131_s0, 0 }
  0x14   : > { %p183_p6 = scmp.eq.s32.totalorder %s684_s15, 1  ;;  %p685_p8 = scmp.ge.s32.totalorder %s1045_s14, 1 }
  0x15   : > { %p1140_p7 = por %p1394_p4, %p48_p3  ;;  %p190_p10 = scmp.lt.s32.totalorder %s1045_s14, 3 }
  0x16   : > { %p1145_p9 = por %p183_p6, %p48_p3  ;;  %s1048_s19 = smov [#allocation7]  }
  0x17   : > { %s1397_s16 = scalar_select %p1140_p7, 1, 0 }
  0x18   : > { %s1398_s17 = scalar_select %p1145_p9, 1, 0 }
  0x19   : > { %p1150_p11 = pnand %p685_p8, %p190_p10  ;;  %s205_s20 = sshll.u32 %s1048_s19, 4  ;;  %s1154_s20 = int_to_ptr.vmem [resolvable:$true] %s205_s20 }
  0x1a   : > { %s1049_s22 = smov [#allocation9]   ;;  %s887_s26 = scalar_lea.hbm %s1389_s3, 1024 }
  0x1b   : > { %p795_p12 = pneg %p1150_p11  ;;  %s221_s23 = sshll.u32 %s1049_s22, 4  ;;  %s1165_s23 = int_to_ptr.vmem [resolvable:$true] %s221_s23 }
  0x1c   : > { %p888_p1 = scmp.ne.s32.totalorder %s1389_s3, %s887_s26  ;;  %p894_p8 = scmp.lt.u32.totalorder %s887_s26, %s1389_s3 }
  0x1d   : > { %p1161_p0 = pnand %p795_p12, %p1394_p4 }
  0x1f   : > { %p889_p2 = pneg %p1161_p0 }
  0x21   : > { %p890_p3 = pnand %p889_p2, %p888_p1 }
  0x23   : > { %p891_p6 = pneg %p890_p3 }
  0x25   : > { %p896_p10 = pnand %p894_p8, %p891_p6 }
  0x27   : > { %899 = shalt.err (!%p896_p10)
}
  0x28   : > { %s900_s8 = scalar_lea.vmem %s1154_s20, 1024  ;;  %p908_p5 = scmp.lt.s32.totalorder %s1154_s20, %s1154_s20 }
  0x29   : > { %p901_p12 = scmp.ne.s32.totalorder %s1154_s20, %s900_s8  ;;  %p909_p1 = scmp.lt.s32.totalorder %s900_s8, %s900_s8 }
  0x2b   : > { %p903_p13 = pnand %p901_p12, %p889_p2  ;;  %p910_p3 = por %p909_p1, %p908_p5 }
  0x2d   : > { %p904_p4 = pneg %p903_p13 }
  0x2f   : > { %p911_p9 = pnand %p910_p3, %p904_p4 }
  0x31   : > { %914 = shalt.err (!%p911_p9)
}
  0x32   : > { %s1050_s9 = smov 64   ;;  %s1051_s10 = smov 4  }
  0x33   : > { %798 = dma.hbm_to_vmem [thread:$0]  (!%p1161_p0), %s1389_s3, 1024, %s1154_s20, [#allocation8], %s1050_s9, %s1050_s9, %s1051_s10  }
  0x34   : > { %s915_s25 = scalar_lea.hbm %s1391_s5, 1024 }
  0x35   : > { %p916_p4 = scmp.ne.s32.totalorder %s1391_s5, %s915_s25  ;;  %p922_p13 = scmp.lt.u32.totalorder %s915_s25, %s1391_s5 }
  0x37   : > { %p918_p5 = pnand %p916_p4, %p889_p2 }
  0x39   : > { %p919_p9 = pneg %p918_p5 }
  0x3b   : > { %p924_p6 = pnand %p922_p13, %p919_p9 }
  0x3d   : > { %927 = shalt.err (!%p924_p6)
}
  0x3e   : > { %s928_s20 = scalar_lea.vmem %s1165_s23, 1024  ;;  %p936_p1 = scmp.lt.s32.totalorder %s1165_s23, %s1165_s23 }
  0x3f   : > { %p929_p8 = scmp.ne.s32.totalorder %s1165_s23, %s928_s20  ;;  %p937_p3 = scmp.lt.s32.totalorder %s928_s20, %s928_s20 }
  0x41   : > { %p931_p10 = pnand %p929_p8, %p889_p2  ;;  %p938_p4 = por %p937_p3, %p936_p1 }
  0x43   : > { %p932_p12 = pneg %p931_p10 }
  0x45   : > { %p939_p5 = pnand %p938_p4, %p932_p12 }
  0x47   : > { %942 = shalt.err (!%p939_p5)
}
  0x48   : > { %801 = dma.hbm_to_vmem [thread:$0]  (!%p1161_p0), %s1391_s5, 1024, %s1165_s23, [#allocation8], %s1050_s9, %s1050_s9, %s1051_s10  }
  0x49   : > { %s1226_s21 = sadd.s32 1, %s1045_s14   ;;  %s35_s15 = sadd.s32 1, %s1041_s13 }
  0x4a   : > { %s32_s19 = ssub.s32 %s1045_s14, %s1226_s21  ;;  %p42_p2 = scmp.ne.s32.totalorder %s1041_s13, %s1037_s12 }
  0x4b   : > { %p33_p9 = scmp.eq.s32.totalorder %s32_s19, 0  ;;  %p43_p13 = scmp.eq.s32.totalorder %s1045_s14, 0 }
  0x4c   : > { %p1401_p6 = scmp.eq.s32.totalorder %s1131_s0, 1  ;;  %p812_p10 = scmp.lt.s32.totalorder %s1045_s14, 2 }
  0x4d   : > { %s1242_s24 = scalar_select %p33_p9, %s1041_s13, %s35_s15  }
  0x4e   : > { %p1236_p8 = por %p1401_p6, %p42_p2  ;;  %p44_p12 = por %p43_p13, %p42_p2 }
  0x4f   : > { %s238_s25 = sand.u32 1, %s1041_s13   ;;  %s723_s23 = sshll.u32 %s1045_s14, 7 }
  0x50   : > { %s1402_s22 = scalar_select %p1236_p8, 1, 0 }
  0x51   : > { %s689_s26 = sshll.u32 %s238_s25, 3  ;;  %s1249_s29 = scalar_lea.hbm %s1387_s1, %s723_s23 }
  0x52   : > { %s242_s20 = scalar_lea.vmem [#allocation4], %s689_s26  ;;  %p1253_p0 = pnand %p812_p10, %p44_p12 }
  0x53   : > { %s249_s30 = sshll.u32 %s242_s20, 4  ;;  %s1257_s15 = scalar_lea.sflag [#allocation5], %s238_s25  ;;  %s1251_s30 = int_to_ptr.vmem [resolvable:$true] %s249_s30 }
  0x54   : > { %s943_s19 = scalar_lea.hbm %s1249_s29, 128  ;;  %p945_p3 = pneg %p1253_p0 }
  0x55   : > { %p944_p1 = scmp.ne.s32.totalorder %s1249_s29, %s943_s19  ;;  %s948_s27 = scalar_lea.hbm %s1387_s1, 256 }
  0x56   : > { %p949_p2 = scmp.lt.u32.totalorder %s1249_s29, %s1387_s1  ;;  %p950_p9 = scmp.lt.u32.totalorder %s948_s27, %s943_s19 }
  0x57   : > { %p946_p4 = pnand %p945_p3, %p944_p1  ;;  %p952_p6 = scmp.lt.u32.totalorder %s943_s19, %s1249_s29 }
  0x58   : > { %p951_p13 = por %p950_p9, %p949_p2 }
  0x59   : > { %p947_p5 = pneg %p946_p4 }
  0x5a   : > { %p953_p10 = por %p952_p6, %p951_p13 }
  0x5c   : > { %p954_p12 = pnand %p953_p10, %p947_p5 }
  0x5e   : > { %957 = shalt.err (!%p954_p12)
}
  0x5f   : > { %s958_s25 = scalar_lea.vmem %s1251_s30, 128  ;;  %s1052_s26 = smov [#allocation4]  }
  0x60   : > { %p959_p1 = scmp.ne.s32.totalorder %s1251_s30, %s958_s25  ;;  %s963_s23 = sshll.u32 %s1052_s26, 4  ;;  %s964_s23 = int_to_ptr.vmem [resolvable:$false] %s963_s23 }
  0x61   : > { %s965_s28 = scalar_lea.vmem %s964_s23, 256  ;;  %p966_p7 = scmp.lt.s32.totalorder %s1251_s30, %s964_s23 }
  0x62   : > { %p961_p4 = pnand %p959_p1, %p945_p3  ;;  %p967_p2 = scmp.lt.s32.totalorder %s965_s28, %s958_s25 }
  0x64   : > { %p962_p8 = pneg %p961_p4  ;;  %p968_p9 = por %p967_p2, %p966_p7 }
  0x66   : > { %p969_p13 = pnand %p968_p9, %p962_p8 }
  0x68   : > { %972 = shalt.err (!%p969_p13)
}
  0x69   : > { %805 = dma.hbm_to_vmem [thread:$0]  (!%p1253_p0), %s1249_s29, 128, %s1251_s30, %s1257_s15, %s1050_s9, %s1050_s9, %s1051_s10  }
  0x6a   : > { %261 = sbr.rel (%p1150_p11) target bundleno = 625 (0x271), region = 44  ;;  %s1291_s19 = sand.u32 (!%p1150_p11), 1, %s1037_s12  }
  0x6b   : > { %s693_s27 = sshll.u32 (!%p1150_p11), %s1291_s19, 3  ;;  %s264_s20 = scalar_lea.sflag (!%p1150_p11), [#allocation5], %s1291_s19 }
  0x6c   : > { %s1295_s25 = scalar_lea.vmem (!%p1150_p11), [#allocation4], %s693_s27  ;;  %p1404_p7 = scmp.ne.s32.totalorder (!%p1150_p11), %s1397_s16, 0 }
  0x71   : > { %1020 = dma.done.wait (%p1404_p7), %s264_s20, 128  }
  0x72   : > { %1022 = vsyncadd (%p1404_p7), %s264_s20, 4294967168  ;;  %p1405_p8 = scmp.eq.s32.totalorder %s1131_s0, 0 }
  0x74   : > { %1024 = dma.done.wait (%p1405_p8), [#allocation8], 2048   ;;  %p1406_p11 = pmov %p1405_p8 }
  0x75   : > { %v1053_v0 = vmov 0.0   ;;  %vm1054_vm0 = vmmov 0   ;;  %s697_s18 = sshll.u32 %s1131_s0, 1  ;;  %v857_v1 = vld [vmem:[#allocation7] sm:$0xff]   ;;  %v858_v2 = vld [vmem:[#allocation7 + $0x8] sm:$0xff]   ;;  %v859_v3 = vld [vmem:[#allocation7 + $0x10] sm:$0xff]  }
  0x76   : > { %1026 = vsyncadd (%p1406_p11), [#allocation8], 4294965248  ;;  %743 = vmatprep.subr.bf16.mxu0 %v1053_v0  ;;  %759 = vmatprep.mubr.msk.bf16.mxu0 %vm1054_vm0, %v1053_v0  ;;  %s316_s16 = sadd.s32 1, %s697_s18  ;;  %s309_s10 = sld [smem:[#allocation3 + %s697_s18]]  ;;  %v860_v4 = vld [vmem:[#allocation7 + $0x18] sm:$0xff]   ;;  %v861_v5 = vld [vmem:[#allocation7 + $0x20] sm:$0xff]  }
  0x77   : > { %763 = vmatprep.subr.bf16.mxu1 %v1053_v0  ;;  %779 = vmatprep.mubr.msk.bf16.mxu1 %vm1054_vm0, %v1053_v0  ;;  %s317_s9 = sld [smem:[#allocation3 + %s316_s16]]  ;;  %v862_v7 = vld [vmem:[#allocation7 + $0x28] sm:$0xff]   ;;  %v698_v9 = vld [vmem:[%s1295_s25 + $0x4] sm:$0xf]  ;;  %v311_v13 = vld [vmem:[%s1295_s25] sm:$0xf] }
  0x78   : > { %744 = vmatpush3.bf16.msra.mxu0 %v857_v1  ;;  %v308_v8 = vld [vmem:[%s1388_s2] sm:$0xf]  ;;  %v863_v11 = vld [vmem:[#allocation7 + $0x30] sm:$0xff]   ;;  %v864_v14 = vld [vmem:[#allocation7 + $0x38] sm:$0xff]   ;;  %vm328_vm3 = vcmask 1043456   ;;  %s696_s28 = sshll.u32 %s1291_s19, 4 }
  0x79   : > { %745 = vmatprep.subr.bf16.mxu0 %v1053_v0  ;;  %v865_v18 = vld [vmem:[#allocation9] sm:$0xff]   ;;  %v866_v19 = vld [vmem:[#allocation9 + $0x8] sm:$0xff]   ;;  %v867_v20 = vld [vmem:[#allocation9 + $0x10] sm:$0xff]   ;;  %s303_s25 = scalar_lea.vmem [#allocation10], %s696_s28  ;;  %s724_s16 = sshll.u32 %s1131_s0, 8 }
  0x7a   : > { %764 = vmatpush3.bf16.msra.mxu1 %v865_v18  ;;  %v868_v21 = vld [vmem:[#allocation9 + $0x18] sm:$0xff]   ;;  %v869_v22 = vld [vmem:[#allocation9 + $0x20] sm:$0xff]   ;;  %v870_v23 = vld [vmem:[#allocation9 + $0x28] sm:$0xff]   ;;  %s592_s18 = sshll.u32 %s303_s25, 4  ;;  %p1407_p6 = scmp.ne.s32.totalorder %s1402_s22, 0  ;;  %s1337_s18 = int_to_ptr.vmem [resolvable:$true] %s592_s18 }
  0x7b   : > { %765 = vmatprep.subr.bf16.mxu1 %v1053_v0  ;;  %v871_v24 = vld [vmem:[#allocation9 + $0x30] sm:$0xff]   ;;  %v872_v25 = vld [vmem:[#allocation9 + $0x38] sm:$0xff]   ;;  %v700_v26 = vld [vmem:[%s1390_s4] ss:$0 sm:$0xff]  ;;  %s973_s0 = scalar_lea.vmem %s1337_s18, 256  ;;  %s1055_s8 = smov [#allocation10]  }
  0x7c   : > { %746 = vmatpush3.bf16.msra.mxu0 %v858_v2  ;;  %p310_p3 = scmp.ne.s32.totalorder %s309_s10, 0  ;;  %v709_v52 = vld [vmem:[%s1392_s6] ss:$0 sm:$0xff]  ;;  %p974_p5 = scmp.ne.s32.totalorder %s1337_s18, %s973_s0 }
  0x7d   : > { %747 = vmatprep.subr.bf16.mxu0 %v1053_v0  ;;  %p318_p0 = scmp.ne.s32.totalorder %s317_s9, 0  ;;  %s977_s15 = sshll.u32 %s1055_s8, 4  ;;  %s978_s15 = int_to_ptr.vmem [resolvable:$false] %s977_s15 }
  0x7e   : > { %s312_s30 = scalar_select %p310_p3, 1, 0  ;;  %766 = vmatpush3.bf16.msra.mxu1 %v866_v19 }
  0x7f   : > { %s321_s29 = scalar_select %p318_p0, 1, 0  ;;  %767 = vmatprep.subr.bf16.mxu1 %v1053_v0 }
  0x80   : > { %748 = vmatpush3.bf16.msra.mxu0 %v859_v3  ;;  %v313_v10 = vstv %s312_s30  ;;  %s579_s30 = scalar_lea.sflag [#allocation6], %s1291_s19  ;;  %p975_p10 = pnand %p974_p5, %p1407_p6 }
  0x81   : > { %749 = vmatprep.subr.bf16.mxu0 %v1053_v0  ;;  %v322_v6 = vstv %s321_s29  ;;  %vm314_vm2 = vcmp.eq.s32.totalorder %v313_v10, 1  ;;  %s1342_s29 = scalar_lea.hbm %s1393_s7, %s724_s16  ;;  %s979_s26 = scalar_lea.vmem %s978_s15, 512 }
  0x82   : > { %vm323_vm1 = vcmp.eq.s32.totalorder %v322_v6, 1  ;;  %v315_v16 = vsel %vm314_vm2, %v308_v8, %v311_v13  ;;  %768 = vmatpush3.bf16.msra.mxu1 %v867_v20  ;;  %p976_p12 = pneg %p975_p10  ;;  %p980_p1 = scmp.lt.s32.totalorder %s1337_s18, %s978_s15 }
  0x83   : > { %v324_v12 = vsel %vm323_vm1, %v308_v8, %v698_v9  ;;  %769 = vmatprep.subr.bf16.mxu1 %v1053_v0  ;;  %p981_p4 = scmp.lt.s32.totalorder %s979_s26, %s973_s0 }
  0x84   : > { %750 = vmatpush3.bf16.msra.mxu0 %v860_v4  ;;  %v699_v15 = vcombine.low %v324_v12, %v324_v12 }
  0x85   : > { %751 = vmatprep.subr.bf16.mxu0 %v1053_v0  ;;  %p982_p2 = por %p981_p4, %p980_p1 }
  0x86   : > { %v331_v17 = vsel %vm328_vm3, %v315_v16, %v699_v15  ;;  %770 = vmatpush3.bf16.msra.mxu1 %v868_v21 }
  0x87   : > { %771 = vmatprep.subr.bf16.mxu1 %v1053_v0  ;;  %p983_p9 = pnand %p982_p2, %p976_p12 }
  0x88   : > { %752 = vmatpush3.bf16.msra.mxu0 %v861_v5 }
  0x89   : > { %753 = vmatprep.subr.bf16.mxu0 %v1053_v0 }
  0x8a   : > { %772 = vmatpush3.bf16.msra.mxu1 %v869_v22 }
  0x8b   : > { %773 = vmatprep.subr.bf16.mxu1 %v1053_v0 }
  0x8c   : > { %754 = vmatpush3.bf16.msra.mxu0 %v862_v7 }
  0x8d   : > { %755 = vmatprep.subr.bf16.mxu0 %v1053_v0 }
  0x8e   : > { %774 = vmatpush3.bf16.msra.mxu1 %v870_v23 }
  0x8f   : > { %775 = vmatprep.subr.bf16.mxu1 %v1053_v0 }
  0x90   : > { %756 = vmatpush3.bf16.msra.mxu0 %v863_v11 }
  0x91   : > { %757 = vmatprep.subr.bf16.mxu0 %v1053_v0 }
  0x92   : > { %776 = vmatpush3.bf16.msra.mxu1 %v871_v24 }
  0x93   : > { %777 = vmatprep.subr.bf16.mxu1 %v1053_v0 }
  0x94   : > { %758 = vmatpush3.bf16.msra.mxu0 %v864_v14 }
  0x96   : > { %778 = vmatpush3.bf16.msra.mxu1 %v872_v25 }
  0x97   : > { %760 = vmatmul.mubr.bf16.vlgmr.msra.gmra.mrb[0].mxu0 %v331_v17 }
 0x16a   : > { %v438_v27 = vpop.f32.mrb[0].mxu0 }
 0x16b   : > { %v439_v28 = vadd.f32 %v700_v26, %v438_v27  ;;  %v761_v29 = vpop.f32.mrb[1].mxu0 }
 0x16c   : > { %v441_v30 = vpop.f32.mrb[2].mxu0 }
 0x16d   : > { %v447_v31 = vmul.f32 0.044715, %v439_v28  ;;  %v442_v32 = vadd.f32 %v700_v26, %v441_v30  ;;  %v762_v33 = vpop.f32.mrb[3].mxu0  ;;  %v445_v46 = vmul.f32 0.5, %v439_v28 }
 0x16f   : > { %v449_v34 = vmul.f32 %v447_v31, %v439_v28  ;;  %v448_v35 = vmul.f32 0.044715, %v442_v32  ;;  %v446_v47 = vmul.f32 0.5, %v442_v32 }
 0x171   : > { %v451_v36 = vmul.f32 %v449_v34, %v439_v28  ;;  %v450_v37 = vmul.f32 %v448_v35, %v442_v32 }
 0x173   : > { %v452_v38 = vmul.f32 %v450_v37, %v442_v32  ;;  %v453_v39 = vadd.f32 %v451_v36, %v439_v28 }
 0x175   : > { %v454_v40 = vadd.f32 %v452_v38, %v442_v32  ;;  %v455_v41 = vmul.f32 0.7978846, %v453_v39 }
 0x177   : > { %v456_v42 = vmul.f32 0.7978846, %v454_v40  ;;  %873 = vtanh.f32 %v455_v41 }
 0x179   : > { %875 = vtanh.f32 %v456_v42 }
 0x181   : > { %v874_v43 = vpop.eup %873 }
 0x182   : > { %v459_v44 = vadd.f32 1.0, %v874_v43 }
 0x183   : > { %v876_v45 = vpop.eup %875 }
 0x184   : > { %v460_v48 = vadd.f32 1.0, %v876_v45  ;;  %v461_v49 = vmul.f32 %v459_v44, %v445_v46 }
 0x186   : > { %v462_v50 = vmul.f32 %v460_v48, %v446_v47 }
 0x188   : > { %v463_v51 = vpack.c.bf16 %v462_v50, %v461_v49 }
 0x18a   : > { %780 = vmatmul.mubr.bf16.vlgmr.msra.gmra.mrb[0].mxu1 %v463_v51 }
 0x25d   : > { %v569_v53 = vpop.f32.mrb[0].mxu1 }
 0x25e   : > { %v570_v54 = vadd.f32 %v709_v52, %v569_v53  ;;  %v781_v55 = vpop.f32.mrb[1].mxu1 }
 0x25f   : > { %v572_v56 = vpop.f32.mrb[2].mxu1 }
 0x260   : > { %576 = vst [vmem:[%s303_s25] sm:$0xff] %v570_v54  ;;  %v573_v57 = vadd.f32 %v709_v52, %v572_v56  ;;  %v782_v58 = vpop.f32.mrb[3].mxu1 }
 0x262   : > { %577 = vst [vmem:[%s303_s25 + $0x8] sm:$0xff] %v573_v57 }
 0x263   : > { %986 = shalt.err (!%p983_p9)
}
 0x264   : > { %s987_s23 = scalar_lea.hbm %s1342_s29, 256  ;;  %s991_s20 = scalar_lea.hbm %s1393_s7, 512 }
 0x265   : > { %p988_p13 = scmp.ne.s32.totalorder %s1342_s29, %s987_s23  ;;  %p992_p11 = scmp.lt.u32.totalorder %s1342_s29, %s1393_s7 }
 0x266   : > { %p993_p0 = scmp.lt.u32.totalorder %s991_s20, %s987_s23  ;;  %p995_p5 = scmp.lt.u32.totalorder %s987_s23, %s1342_s29 }
 0x267   : > { %p989_p7 = pnand %p988_p13, %p1407_p6 }
 0x268   : > { %p994_p3 = por %p993_p0, %p992_p11 }
 0x269   : > { %p990_p8 = pneg %p989_p7 }
 0x26a   : > { %p996_p10 = por %p995_p5, %p994_p3 }
 0x26c   : > { %p997_p12 = pnand %p996_p10, %p990_p8 }
 0x26e   : > { %1000 = shalt.err (!%p997_p12)
}
 0x26f   : > { %s1056_s9 = smov 128   ;;  %s1057_s10 = smov 8  }
 0x270   : > { %793 = dma.vmem_to_hbm [thread:$0]  (%p1407_p6), %s1337_s18, 256, %s1342_s29, %s579_s30, %s1056_s9, %s1056_s9, %s1057_s10  }
 0x271 PF: > { %s607_s0 = sand.u32 1, %s1033_s11   ;;  %p1408_p1 = scmp.ne.s32.totalorder %s1398_s17, 0 }
 0x272   : > { %p1409_p4 = scmp.ge.s32.totalorder %s1045_s14, 2  ;;  %s608_s8 = scalar_lea.sflag [#allocation6], %s607_s0 }
 0x274   : > { %p807_p2 = pnand %p1409_p4, %p1408_p1 }
 0x276   : > { %1028 = dma.done.wait (!%p807_p2), %s608_s8, 256  }
 0x277   : > { %1030 = vsyncadd (!%p807_p2), %s608_s8, 4294967040  ;;  %p25_p9 = scmp.ge.s32.totalorder %s1226_s21, 4   ;;  %s1410_s11 = smov %s1037_s12 }
 0x278   : > { %s1411_s12 = smov %s1041_s13  ;;  %s1412_s13 = smov %s1242_s24 }
 0x279   : > { %s1413_s14 = smov %s1226_s21  ;;  %27 = sbr.rel (!%p25_p9) target bundleno = 18 (0x12), region = 98 }
 0x280   :  { %613 = vsyncpa [#allocation5], 1 }
 0x281   :  { %615 = vsyncpa [#allocation5 + $0x1], 1 }
 0x282   :  { %616 = vsyncpa [#allocation8], 1 }
 0x283   :  { %617 = vsyncpa [#allocation6], 1 }
 0x284   :  { %619 = vsyncpa [#allocation6 + $0x1], 1 }

// kernel: tpu_custom_call.1
= control target key start
LH: loop header
LB: loop body
LE: loop exit
PB: predicated region body
PF: predicated region fallthrough
CT: control target
= control target key end

     0   :  { %s1386_s0 = inlined_call_operand.hbm [shape: s32[4], index: 0, kind: input, shape index: {}]   ;;  %s1387_s1 = inlined_call_operand.hbm [shape: bf16[4,8,128], index: 1, kind: input, shape index: {}]   ;;  %s1388_s2 = inlined_call_operand.vmem [shape: bf16[8,128], index: 2, kind: input, shape index: {}]   ;;  %s1389_s3 = inlined_call_operand.hbm [shape: bf16[128,128], index: 3, kind: input, shape index: {}]   ;;  %s1390_s4 = inlined_call_operand.vmem [shape: f32[1,128], index: 4, kind: input, shape index: {}]   ;;  %s1391_s5 = inlined_call_operand.hbm [shape: bf16[128,128], index: 5, kind: input, shape index: {}]   ;;  %s1392_s6 = inlined_call_operand.vmem [shape: f32[1,128], index: 6, kind: input, shape index: {}]   ;;  %s1393_s7 = inlined_call_operand.hbm [shape: f32[32,128], index: 7, kind: output, shape index: {}]  }
   0x1   :  { %s877_s26 = scalar_lea.hbm %s1386_s0, 16 }
   0x2   :  { %p878_p0 = scmp.ne.s32.totalorder %s1386_s0, %s877_s26  ;;  %p881_p1 = scmp.lt.u32.totalorder %s877_s26, %s1386_s0 }
   0x4   :  { %p883_p2 = pnand %p881_p1, %p878_p0 }
   0x6   :  { %886 = shalt.err (!%p883_p2)  }
   0x7   :  { %s1047_s8 = smov [#allocation3]  }
   0x8   :  { %13 = dma.hbm_to_smem %s1386_s0, 16, %s1047_s8, [#allocation2] }
   0x9   :  { %1017 = dma.done.wait [#allocation2], 16 }
   0xa   :  { %1018 = vsyncadd [#allocation2], 4294967280 }
   0xb   :  { %15 = sfence }
   0xc   :  { %16 = vsyncpa [#allocation5], 0 }
   0xd   :  { %18 = vsyncpa [#allocation5 + $0x1], 0 }
   0xe   :  { %19 = vsyncpa [#allocation8], 0 }
   0xf   :  { %20 = vsyncpa [#allocation6], 0 }
  0x10   :  { %22 = vsyncpa [#allocation6 + $0x1], 0  ;;  %s1110_s11 = smov 0   ;;  %s1112_s12 = smov 0  }
  0x11   :  { %s1114_s13 = smov 0   ;;  %s1116_s14 = smov 0  }
  0x12 LB: > { %s1131_s0 = sadd.s32 4294967295, %s1045_s14   ;;  %s684_s15 = sadd.s32 4294967294, %s1045_s14   ;;  %s1045_s14 = sphi %s1116_s14, %s1413_s14   ;;  %s1041_s13 = sphi %s1114_s13, %s1412_s13   ;;  %s1037_s12 = sphi %s1112_s12, %s1411_s12   ;;  %s1033_s11 = sphi %s1110_s11, %s1410_s11  }
  0x13   : > { %p48_p3 = scmp.ne.s32.totalorder %s1037_s12, %s1033_s11  ;;  %p1394_p4 = scmp.eq.s32.totalorder %s1131_s0, 0 }
  0x14   : > { %p183_p6 = scmp.eq.s32.totalorder %s684_s15, 1  ;;  %p685_p8 = scmp.ge.s32.totalorder %s1045_s14, 1 }
  0x15   : > { %p1140_p7 = por %p1394_p4, %p48_p3  ;;  %p190_p10 = scmp.lt.s32.totalorder %s1045_s14, 3 }
  0x16   : > { %p1145_p9 = por %p183_p6, %p48_p3  ;;  %s1048_s19 = smov [#allocation7]  }
  0x17   : > { %s1397_s16 = scalar_select %p1140_p7, 1, 0 }
  0x18   : > { %s1398_s17 = scalar_select %p1145_p9, 1, 0 }
  0x19   : > { %p1150_p11 = pnand %p685_p8, %p190_p10  ;;  %s205_s20 = sshll.u32 %s1048_s19, 4  ;;  %s1154_s20 = int_to_ptr.vmem [resolvable:$true] %s205_s20 }
  0x1a   : > { %s1049_s22 = smov [#allocation9]   ;;  %s887_s26 = scalar_lea.hbm %s1389_s3, 1024 }
  0x1b   : > { %p795_p12 = pneg %p1150_p11  ;;  %s221_s23 = sshll.u32 %s1049_s22, 4  ;;  %s1165_s23 = int_to_ptr.vmem [resolvable:$true] %s221_s23 }
  0x1c   : > { %p888_p1 = scmp.ne.s32.totalorder %s1389_s3, %s887_s26  ;;  %p894_p8 = scmp.lt.u32.totalorder %s887_s26, %s1389_s3 }
  0x1d   : > { %p1161_p0 = pnand %p795_p12, %p1394_p4 }
  0x1f   : > { %p889_p2 = pneg %p1161_p0 }
  0x21   : > { %p890_p3 = pnand %p889_p2, %p888_p1 }
  0x23   : > { %p891_p6 = pneg %p890_p3 }
  0x25   : > { %p896_p10 = pnand %p894_p8, %p891_p6 }
  0x27   : > { %899 = shalt.err (!%p896_p10)
}
  0x28   : > { %s900_s8 = scalar_lea.vmem %s1154_s20, 1024  ;;  %p908_p5 = scmp.lt.s32.totalorder %s1154_s20, %s1154_s20 }
  0x29   : > { %p901_p12 = scmp.ne.s32.totalorder %s1154_s20, %s900_s8  ;;  %p909_p1 = scmp.lt.s32.totalorder %s900_s8, %s900_s8 }
  0x2b   : > { %p903_p13 = pnand %p901_p12, %p889_p2  ;;  %p910_p3 = por %p909_p1, %p908_p5 }
  0x2d   : > { %p904_p4 = pneg %p903_p13 }
  0x2f   : > { %p911_p9 = pnand %p910_p3, %p904_p4 }
  0x31   : > { %914 = shalt.err (!%p911_p9)
}
  0x32   : > { %s1050_s9 = smov 64   ;;  %s1051_s10 = smov 4  }
  0x33   : > { %798 = dma.hbm_to_vmem [thread:$0]  (!%p1161_p0), %s1389_s3, 1024, %s1154_s20, [#allocation8], %s1050_s9, %s1050_s9, %s1051_s10  }
  0x34   : > { %s915_s25 = scalar_lea.hbm %s1391_s5, 1024 }
  0x35   : > { %p916_p4 = scmp.ne.s32.totalorder %s1391_s5, %s915_s25  ;;  %p922_p13 = scmp.lt.u32.totalorder %s915_s25, %s1391_s5 }
  0x37   : > { %p918_p5 = pnand %p916_p4, %p889_p2 }
  0x39   : > { %p919_p9 = pneg %p918_p5 }
  0x3b   : > { %p924_p6 = pnand %p922_p13, %p919_p9 }
  0x3d   : > { %927 = shalt.err (!%p924_p6)
}
  0x3e   : > { %s928_s20 = scalar_lea.vmem %s1165_s23, 1024  ;;  %p936_p1 = scmp.lt.s32.totalorder %s1165_s23, %s1165_s23 }
  0x3f   : > { %p929_p8 = scmp.ne.s32.totalorder %s1165_s23, %s928_s20  ;;  %p937_p3 = scmp.lt.s32.totalorder %s928_s20, %s928_s20 }
  0x41   : > { %p931_p10 = pnand %p929_p8, %p889_p2  ;;  %p938_p4 = por %p937_p3, %p936_p1 }
  0x43   : > { %p932_p12 = pneg %p931_p10 }
  0x45   : > { %p939_p5 = pnand %p938_p4, %p932_p12 }
  0x47   : > { %942 = shalt.err (!%p939_p5)
}
  0x48   : > { %801 = dma.hbm_to_vmem [thread:$0]  (!%p1161_p0), %s1391_s5, 1024, %s1165_s23, [#allocation8], %s1050_s9, %s1050_s9, %s1051_s10  }
  0x49   : > { %s1226_s21 = sadd.s32 1, %s1045_s14   ;;  %s35_s15 = sadd.s32 1, %s1041_s13 }
  0x4a   : > { %s32_s19 = ssub.s32 %s1045_s14, %s1226_s21  ;;  %p42_p2 = scmp.ne.s32.totalorder %s1041_s13, %s1037_s12 }
  0x4b   : > { %p33_p9 = scmp.eq.s32.totalorder %s32_s19, 0  ;;  %p43_p13 = scmp.eq.s32.totalorder %s1045_s14, 0 }
  0x4c   : > { %p1401_p6 = scmp.eq.s32.totalorder %s1131_s0, 1  ;;  %p812_p10 = scmp.lt.s32.totalorder %s1045_s14, 2 }
  0x4d   : > { %s1242_s24 = scalar_select %p33_p9, %s1041_s13, %s35_s15  }
  0x4e   : > { %p1236_p8 = por %p1401_p6, %p42_p2  ;;  %p44_p12 = por %p43_p13, %p42_p2 }
  0x4f   : > { %s238_s25 = sand.u32 1, %s1041_s13   ;;  %s723_s23 = sshll.u32 %s1045_s14, 7 }
  0x50   : > { %s1402_s22 = scalar_select %p1236_p8, 1, 0 }
  0x51   : > { %s689_s26 = sshll.u32 %s238_s25, 3  ;;  %s1249_s29 = scalar_lea.hbm %s1387_s1, %s723_s23 }
  0x52   : > { %s242_s20 = scalar_lea.vmem [#allocation4], %s689_s26  ;;  %p1253_p0 = pnand %p812_p10, %p44_p12 }
  0x53   : > { %s249_s30 = sshll.u32 %s242_s20, 4  ;;  %s1257_s15 = scalar_lea.sflag [#allocation5], %s238_s25  ;;  %s1251_s30 = int_to_ptr.vmem [resolvable:$true] %s249_s30 }
  0x54   : > { %s943_s19 = scalar_lea.hbm %s1249_s29, 128  ;;  %p945_p3 = pneg %p1253_p0 }
  0x55   : > { %p944_p1 = scmp.ne.s32.totalorder %s1249_s29, %s943_s19  ;;  %s948_s27 = scalar_lea.hbm %s1387_s1, 256 }
  0x56   : > { %p949_p2 = scmp.lt.u32.totalorder %s1249_s29, %s1387_s1  ;;  %p950_p9 = scmp.lt.u32.totalorder %s948_s27, %s943_s19 }
  0x57   : > { %p946_p4 = pnand %p945_p3, %p944_p1  ;;  %p952_p6 = scmp.lt.u32.totalorder %s943_s19, %s1249_s29 }
  0x58   : > { %p951_p13 = por %p950_p9, %p949_p2 }
  0x59   : > { %p947_p5 = pneg %p946_p4 }
  0x5a   : > { %p953_p10 = por %p952_p6, %p951_p13 }
  0x5c   : > { %p954_p12 = pnand %p953_p10, %p947_p5 }
  0x5e   : > { %957 = shalt.err (!%p954_p12)
}
  0x5f   : > { %s958_s25 = scalar_lea.vmem %s1251_s30, 128  ;;  %s1052_s26 = smov [#allocation4]  }
  0x60   : > { %p959_p1 = scmp.ne.s32.totalorder %s1251_s30, %s958_s25  ;;  %s963_s23 = sshll.u32 %s1052_s26, 4  ;;  %s964_s23 = int_to_ptr.vmem [resolvable:$false] %s963_s23 }
  0x61   : > { %s965_s28 = scalar_lea.vmem %s964_s23, 256  ;;  %p966_p7 = scmp.lt.s32.totalorder %s1251_s30, %s964_s23 }
  0x62   : > { %p961_p4 = pnand %p959_p1, %p945_p3  ;;  %p967_p2 = scmp.lt.s32.totalorder %s965_s28, %s958_s25 }
  0x64   : > { %p962_p8 = pneg %p961_p4  ;;  %p968_p9 = por %p967_p2, %p966_p7 }
  0x66   : > { %p969_p13 = pnand %p968_p9, %p962_p8 }
  0x68   : > { %972 = shalt.err (!%p969_p13)
}
  0x69   : > { %805 = dma.hbm_to_vmem [thread:$0]  (!%p1253_p0), %s1249_s29, 128, %s1251_s30, %s1257_s15, %s1050_s9, %s1050_s9, %s1051_s10  }
  0x6a   : > { %261 = sbr.rel (%p1150_p11) target bundleno = 625 (0x271), region = 44  ;;  %s1291_s19 = sand.u32 (!%p1150_p11), 1, %s1037_s12  }
  0x6b   : > { %s693_s27 = sshll.u32 (!%p1150_p11), %s1291_s19, 3  ;;  %s264_s20 = scalar_lea.sflag (!%p1150_p11), [#allocation5], %s1291_s19 }
  0x6c   : > { %s1295_s25 = scalar_lea.vmem (!%p1150_p11), [#allocation4], %s693_s27  ;;  %p1404_p7 = scmp.ne.s32.totalorder (!%p1150_p11), %s1397_s16, 0 }
  0x71   : > { %1020 = dma.done.wait (%p1404_p7), %s264_s20, 128  }
  0x72   : > { %1022 = vsyncadd (%p1404_p7), %s264_s20, 4294967168  ;;  %p1405_p8 = scmp.eq.s32.totalorder %s1131_s0, 0 }
  0x74   : > { %1024 = dma.done.wait (%p1405_p8), [#allocation8], 2048   ;;  %p1406_p11 = pmov %p1405_p8 }
  0x75   : > { %v1053_v0 = vmov 0.0   ;;  %vm1054_vm0 = vmmov 0   ;;  %s697_s18 = sshll.u32 %s1131_s0, 1  ;;  %v857_v1 = vld [vmem:[#allocation7] sm:$0xff]   ;;  %v858_v2 = vld [vmem:[#allocation7 + $0x8] sm:$0xff]   ;;  %v859_v3 = vld [vmem:[#allocation7 + $0x10] sm:$0xff]  }
  0x76   : > { %1026 = vsyncadd (%p1406_p11), [#allocation8], 4294965248  ;;  %743 = vmatprep.subr.bf16.mxu0 %v1053_v0  ;;  %759 = vmatprep.mubr.msk.bf16.mxu0 %vm1054_vm0, %v1053_v0  ;;  %s316_s16 = sadd.s32 1, %s697_s18  ;;  %s309_s10 = sld [smem:[#allocation3 + %s697_s18]]  ;;  %v860_v4 = vld [vmem:[#allocation7 + $0x18] sm:$0xff]   ;;  %v861_v5 = vld [vmem:[#allocation7 + $0x20] sm:$0xff]  }
  0x77   : > { %763 = vmatprep.subr.bf16.mxu1 %v1053_v0  ;;  %779 = vmatprep.mubr.msk.bf16.mxu1 %vm1054_vm0, %v1053_v0  ;;  %s317_s9 = sld [smem:[#allocation3 + %s316_s16]]  ;;  %v862_v7 = vld [vmem:[#allocation7 + $0x28] sm:$0xff]   ;;  %v698_v9 = vld [vmem:[%s1295_s25 + $0x4] sm:$0xf]  ;;  %v311_v13 = vld [vmem:[%s1295_s25] sm:$0xf] }
  0x78   : > { %744 = vmatpush3.bf16.msra.mxu0 %v857_v1  ;;  %v308_v8 = vld [vmem:[%s1388_s2] sm:$0xf]  ;;  %v863_v11 = vld [vmem:[#allocation7 + $0x30] sm:$0xff]   ;;  %v864_v14 = vld [vmem:[#allocation7 + $0x38] sm:$0xff]   ;;  %vm328_vm3 = vcmask 1043456   ;;  %s696_s28 = sshll.u32 %s1291_s19, 4 }
  0x79   : > { %745 = vmatprep.subr.bf16.mxu0 %v1053_v0  ;;  %v865_v18 = vld [vmem:[#allocation9] sm:$0xff]   ;;  %v866_v19 = vld [vmem:[#allocation9 + $0x8] sm:$0xff]   ;;  %v867_v20 = vld [vmem:[#allocation9 + $0x10] sm:$0xff]   ;;  %s303_s25 = scalar_lea.vmem [#allocation10], %s696_s28  ;;  %s724_s16 = sshll.u32 %s1131_s0, 8 }
  0x7a   : > { %764 = vmatpush3.bf16.msra.mxu1 %v865_v18  ;;  %v868_v21 = vld [vmem:[#allocation9 + $0x18] sm:$0xff]   ;;  %v869_v22 = vld [vmem:[#allocation9 + $0x20] sm:$0xff]   ;;  %v870_v23 = vld [vmem:[#allocation9 + $0x28] sm:$0xff]   ;;  %s592_s18 = sshll.u32 %s303_s25, 4  ;;  %p1407_p6 = scmp.ne.s32.totalorder %s1402_s22, 0  ;;  %s1337_s18 = int_to_ptr.vmem [resolvable:$true] %s592_s18 }
  0x7b   : > { %765 = vmatprep.subr.bf16.mxu1 %v1053_v0  ;;  %v871_v24 = vld [vmem:[#allocation9 + $0x30] sm:$0xff]   ;;  %v872_v25 = vld [vmem:[#allocation9 + $0x38] sm:$0xff]   ;;  %v700_v26 = vld [vmem:[%s1390_s4] ss:$0 sm:$0xff]  ;;  %s973_s0 = scalar_lea.vmem %s1337_s18, 256  ;;  %s1055_s8 = smov [#allocation10]  }
  0x7c   : > { %746 = vmatpush3.bf16.msra.mxu0 %v858_v2  ;;  %p310_p3 = scmp.ne.s32.totalorder %s309_s10, 0  ;;  %v709_v52 = vld [vmem:[%s1392_s6] ss:$0 sm:$0xff]  ;;  %p974_p5 = scmp.ne.s32.totalorder %s1337_s18, %s973_s0 }
  0x7d   : > { %747 = vmatprep.subr.bf16.mxu0 %v1053_v0  ;;  %p318_p0 = scmp.ne.s32.totalorder %s317_s9, 0  ;;  %s977_s15 = sshll.u32 %s1055_s8, 4  ;;  %s978_s15 = int_to_ptr.vmem [resolvable:$false] %s977_s15 }
  0x7e   : > { %s312_s30 = scalar_select %p310_p3, 1, 0  ;;  %766 = vmatpush3.bf16.msra.mxu1 %v866_v19 }
  0x7f   : > { %s321_s29 = scalar_select %p318_p0, 1, 0  ;;  %767 = vmatprep.subr.bf16.mxu1 %v1053_v0 }
  0x80   : > { %748 = vmatpush3.bf16.msra.mxu0 %v859_v3  ;;  %v313_v10 = vstv %s312_s30  ;;  %s579_s30 = scalar_lea.sflag [#allocation6], %s1291_s19  ;;  %p975_p10 = pnand %p974_p5, %p1407_p6 }
  0x81   : > { %749 = vmatprep.subr.bf16.mxu0 %v1053_v0  ;;  %v322_v6 = vstv %s321_s29  ;;  %vm314_vm2 = vcmp.eq.s32.totalorder %v313_v10, 1  ;;  %s1342_s29 = scalar_lea.hbm %s1393_s7, %s724_s16  ;;  %s979_s26 = scalar_lea.vmem %s978_s15, 512 }
  0x82   : > { %vm323_vm1 = vcmp.eq.s32.totalorder %v322_v6, 1  ;;  %v315_v16 = vsel %vm314_vm2, %v308_v8, %v311_v13  ;;  %768 = vmatpush3.bf16.msra.mxu1 %v867_v20  ;;  %p976_p12 = pneg %p975_p10  ;;  %p980_p1 = scmp.lt.s32.totalorder %s1337_s18, %s978_s15 }
  0x83   : > { %v324_v12 = vsel %vm323_vm1, %v308_v8, %v698_v9  ;;  %769 = vmatprep.subr.bf16.mxu1 %v1053_v0  ;;  %p981_p4 = scmp.lt.s32.totalorder %s979_s26, %s973_s0 }
  0x84   : > { %750 = vmatpush3.bf16.msra.mxu0 %v860_v4  ;;  %v699_v15 = vcombine.low %v324_v12, %v324_v12 }
  0x85   : > { %751 = vmatprep.subr.bf16.mxu0 %v1053_v0  ;;  %p982_p2 = por %p981_p4, %p980_p1 }
  0x86   : > { %v331_v17 = vsel %vm328_vm3, %v315_v16, %v699_v15  ;;  %770 = vmatpush3.bf16.msra.mxu1 %v868_v21 }
  0x87   : > { %771 = vmatprep.subr.bf16.mxu1 %v1053_v0  ;;  %p983_p9 = pnand %p982_p2, %p976_p12 }
  0x88   : > { %752 = vmatpush3.bf16.msra.mxu0 %v861_v5 }
  0x89   : > { %753 = vmatprep.subr.bf16.mxu0 %v1053_v0 }
  0x8a   : > { %772 = vmatpush3.bf16.msra.mxu1 %v869_v22 }
  0x8b   : > { %773 = vmatprep.subr.bf16.mxu1 %v1053_v0 }
  0x8c   : > { %754 = vmatpush3.bf16.msra.mxu0 %v862_v7 }
  0x8d   : > { %755 = vmatprep.subr.bf16.mxu0 %v1053_v0 }
  0x8e   : > { %774 = vmatpush3.bf16.msra.mxu1 %v870_v23 }
  0x8f   : > { %775 = vmatprep.subr.bf16.mxu1 %v1053_v0 }
  0x90   : > { %756 = vmatpush3.bf16.msra.mxu0 %v863_v11 }
  0x91   : > { %757 = vmatprep.subr.bf16.mxu0 %v1053_v0 }
  0x92   : > { %776 = vmatpush3.bf16.msra.mxu1 %v871_v24 }
  0x93   : > { %777 = vmatprep.subr.bf16.mxu1 %v1053_v0 }
  0x94   : > { %758 = vmatpush3.bf16.msra.mxu0 %v864_v14 }
  0x96   : > { %778 = vmatpush3.bf16.msra.mxu1 %v872_v25 }
  0x97   : > { %760 = vmatmul.mubr.bf16.vlgmr.msra.gmra.mrb[0].mxu0 %v331_v17 }
 0x16a   : > { %v438_v27 = vpop.f32.mrb[0].mxu0 }
 0x16b   : > { %v439_v28 = vadd.f32 %v700_v26, %v438_v27  ;;  %v761_v29 = vpop.f32.mrb[1].mxu0 }
 0x16c   : > { %v441_v30 = vpop.f32.mrb[2].mxu0 }
 0x16d   : > { %v447_v31 = vmul.f32 0.044715, %v439_v28  ;;  %v442_v32 = vadd.f32 %v700_v26, %v441_v30  ;;  %v762_v33 = vpop.f32.mrb[3].mxu0  ;;  %v445_v46 = vmul.f32 0.5, %v439_v28 }
 0x16f   : > { %v449_v34 = vmul.f32 %v447_v31, %v439_v28  ;;  %v448_v35 = vmul.f32 0.044715, %v442_v32  ;;  %v446_v47 = vmul.f32 0.5, %v442_v32 }
 0x171   : > { %v451_v36 = vmul.f32 %v449_v34, %v439_v28  ;;  %v450_v37 = vmul.f32 %v448_v35, %v442_v32 }
 0x173   : > { %v452_v38 = vmul.f32 %v450_v37, %v442_v32  ;;  %v453_v39 = vadd.f32 %v451_v36, %v439_v28 }
 0x175   : > { %v454_v40 = vadd.f32 %v452_v38, %v442_v32  ;;  %v455_v41 = vmul.f32 0.7978846, %v453_v39 }
 0x177   : > { %v456_v42 = vmul.f32 0.7978846, %v454_v40  ;;  %873 = vtanh.f32 %v455_v41 }
 0x179   : > { %875 = vtanh.f32 %v456_v42 }
 0x181   : > { %v874_v43 = vpop.eup %873 }
 0x182   : > { %v459_v44 = vadd.f32 1.0, %v874_v43 }
 0x183   : > { %v876_v45 = vpop.eup %875 }
 0x184   : > { %v460_v48 = vadd.f32 1.0, %v876_v45  ;;  %v461_v49 = vmul.f32 %v459_v44, %v445_v46 }
 0x186   : > { %v462_v50 = vmul.f32 %v460_v48, %v446_v47 }
 0x188   : > { %v463_v51 = vpack.c.bf16 %v462_v50, %v461_v49 }
 0x18a   : > { %780 = vmatmul.mubr.bf16.vlgmr.msra.gmra.mrb[0].mxu1 %v463_v51 }
 0x25d   : > { %v569_v53 = vpop.f32.mrb[0].mxu1 }
 0x25e   : > { %v570_v54 = vadd.f32 %v709_v52, %v569_v53  ;;  %v781_v55 = vpop.f32.mrb[1].mxu1 }
 0x25f   : > { %v572_v56 = vpop.f32.mrb[2].mxu1 }
 0x260   : > { %576 = vst [vmem:[%s303_s25] sm:$0xff] %v570_v54  ;;  %v573_v57 = vadd.f32 %v709_v52, %v572_v56  ;;  %v782_v58 = vpop.f32.mrb[3].mxu1 }
 0x262   : > { %577 = vst [vmem:[%s303_s25 + $0x8] sm:$0xff] %v573_v57 }
 0x263   : > { %986 = shalt.err (!%p983_p9)
}
 0x264   : > { %s987_s23 = scalar_lea.hbm %s1342_s29, 256  ;;  %s991_s20 = scalar_lea.hbm %s1393_s7, 512 }
 0x265   : > { %p988_p13 = scmp.ne.s32.totalorder %s1342_s29, %s987_s23  ;;  %p992_p11 = scmp.lt.u32.totalorder %s1342_s29, %s1393_s7 }
 0x266   : > { %p993_p0 = scmp.lt.u32.totalorder %s991_s20, %s987_s23  ;;  %p995_p5 = scmp.lt.u32.totalorder %s987_s23, %s1342_s29 }
 0x267   : > { %p989_p7 = pnand %p988_p13, %p1407_p6 }
 0x268   : > { %p994_p3 = por %p993_p0, %p992_p11 }
 0x269   : > { %p990_p8 = pneg %p989_p7 }
 0x26a   : > { %p996_p10 = por %p995_p5, %p994_p3 }
 0x26c   : > { %p997_p12 = pnand %p996_p10, %p990_p8 }
 0x26e   : > { %1000 = shalt.err (!%p997_p12)
}
 0x26f   : > { %s1056_s9 = smov 128   ;;  %s1057_s10 = smov 8  }
 0x270   : > { %793 = dma.vmem_to_hbm [thread:$0]  (%p1407_p6), %s1337_s18, 256, %s1342_s29, %s579_s30, %s1056_s9, %s1056_s9, %s1057_s10  }
 0x271 PF: > { %s607_s0 = sand.u32 1, %s1033_s11   ;;  %p1408_p1 = scmp.ne.s32.totalorder %s1398_s17, 0 }
 0x272   : > { %p1409_p4 = scmp.ge.s32.totalorder %s1045_s14, 2  ;;  %s608_s8 = scalar_lea.sflag [#allocation6], %s607_s0 }
 0x274   : > { %p807_p2 = pnand %p1409_p4, %p1408_p1 }
 0x276   : > { %1028 = dma.done.wait (!%p807_p2), %s608_s8, 256  }
 0x277   : > { %1030 = vsyncadd (!%p807_p2), %s608_s8, 4294967040  ;;  %p25_p9 = scmp.ge.s32.totalorder %s1226_s21, 4   ;;  %s1410_s11 = smov %s1037_s12 }
 0x278   : > { %s1411_s12 = smov %s1041_s13  ;;  %s1412_s13 = smov %s1242_s24 }
 0x279   : > { %s1413_s14 = smov %s1226_s21  ;;  %27 = sbr.rel (!%p25_p9) target bundleno = 18 (0x12), region = 98 }
 0x280   :  { %613 = vsyncpa [#allocation5], 1 }
 0x281   :  { %615 = vsyncpa [#allocation5 + $0x1], 1 }
 0x282   :  { %616 = vsyncpa [#allocation8], 1 }
 0x283   :  { %617 = vsyncpa [#allocation6], 1 }
 0x284   :  { %619 = vsyncpa [#allocation6 + $0x1], 1 }

</bundles_post_ra>
